<compile_context>
chip_gen: v7x
topology: tpu7x:2x2x1
jax: 0.10.0
libtpu: 0.0.40
codegen_flags: <defaults>
</compile_context>

<pallas_src>
import functools

import jax
import jax.numpy as jnp
from jax import lax
from jax.experimental import pallas as pl
from jax.experimental.pallas import tpu as pltpu


def _round_up(v, m):
    return ((v + m - 1) // m) * m


def _choose_time_tile(l_pad, target):
    """Largest multiple of 128 that divides l_pad and is <= target (l_pad is a 128 multiple)."""
    best = 128
    t = 128
    limit = min(l_pad, max(target, 128))
    while t <= limit:
        if l_pad % t == 0:
            best = t
        t += 128
    return best


def _choose_cout_tile(c_out, kcin, w_itemsize, budget_bytes=4 << 20):
    """Tile C_out only when the resident weight slab would be large."""
    if c_out * kcin * w_itemsize <= budget_bytes or c_out % 8 != 0:
        return c_out
    best = None
    t = 8
    while t <= c_out:
        if c_out % t == 0 and t * kcin * w_itemsize <= budget_bytes:
            best = t
        t += 8
    return best if best is not None else 8


def _causal_conv1d_kernel(x_ref, w_ref, b_ref, o_ref, xbuf_ref, *,
                          K, dilation, pad, pad_up, tl, n_lt, c_in,
                          use_im2col, mm_dtype):
    # x_ref   : (C_in, TL)           current time tile of one batch element
    # w_ref   : (tile_co, K*C_in)    weight slab, tap-major contraction layout
    # b_ref   : (tile_co, 1)         bias (f32)
    # o_ref   : (tile_co, TL)
    # xbuf_ref: (C_in, pad_up + TL)  persistent scratch: [causal halo | current tile]
    t = pl.program_id(2)           # time is the innermost grid axis (see invariant above)
    x_cur = x_ref[...]

    if pad > 0:
        @pl.when(t == 0)
        def _zero_halo():
            xbuf_ref[:, :pad_up] = jnp.zeros((c_in, pad_up), dtype=xbuf_ref.dtype)

        # Single 128-lane-aligned store of the tile next to the halo (pad_up % 128 == 0).
        xbuf_ref[:, pad_up:] = x_cur
        off0 = pad_up - pad
        # Tap K-1 is exactly the current tile -> use x_cur directly (no lane rotate).
        taps = [xbuf_ref[:, off0 + k * dilation: off0 + k * dilation + tl]
                for k in range(K - 1)] + [x_cur]
    else:
        taps = [x_cur]

    if mm_dtype is not None:
        taps = [tp.astype(mm_dtype) for tp in taps]

    if use_im2col and K > 1:
        # Small contraction: fold K into one MXU matmul (K*C_in <= 256 by construction).
        xst = jnp.concatenate(taps, axis=0)                                  # (K*C_in, TL)
        y = jnp.dot(w_ref[...], xst, preferred_element_type=jnp.float32)
        y = y + b_ref[...]
    else:
        # Large / unaligned C_in (and the natural v7x MRB path): K accumulating matmuls,
        # accumulator initialized from the bias.
        c_out = o_ref.shape[0]
        y = jnp.broadcast_to(b_ref[...], (c_out, tl)).astype(jnp.float32)
        for k in range(K):
            w_k = w_ref[:, k * c_in:(k + 1) * c_in]                          # (tile_co, C_in)
            y = y + jnp.dot(w_k, taps[k], preferred_element_type=jnp.float32)

    o_ref[...] = y.astype(o_ref.dtype)

    # Carry the causal halo forward for the next time tile (aligned (C_in, pad_up) copy).
    if pad > 0 and n_lt > 1:
        @pl.when(t + 1 < pl.num_programs(2))
        def _carry():
            xbuf_ref[:, :pad_up] = xbuf_ref[:, tl:tl + pad_up]


def causal_conv1d(x, weight, bias, dilation=1, *, tl_target=None, cout_tile=None,
                  matmul_dtype=None):
    """x: (N, C_in, L), weight: (C_out, C_in, K), bias: (C_out,) -> (N, C_out, L)."""
    N, C_in, L = x.shape
    C_out, C_in_w, K = weight.shape
    assert C_in_w == C_in
    pad = (K - 1) * dilation
    pad_up = _round_up(pad, 128) if pad > 0 else 0
    itemsize = jnp.dtype(x.dtype).itemsize

    # Pad the time axis to a lane multiple: lane-dense (unmasked) vst on every tile. Trailing
    # zero columns cannot influence earlier outputs of a causal conv; we slice them off below.
    L_pad = _round_up(L, 128)
    if L_pad != L:
        x = jnp.pad(x, ((0, 0), (0, 0), (0, L_pad - L)))

    # Weight as (C_out, K*C_in), tap-major contraction layout shared by both kernel paths.
    w_dtype = jnp.dtype(matmul_dtype) if matmul_dtype is not None else jnp.dtype(x.dtype)
    w2 = jnp.transpose(weight, (0, 2, 1)).reshape(C_out, K * C_in).astype(w_dtype)
    b2 = bias.astype(jnp.float32).reshape(C_out, 1)
    w_itemsize = jnp.dtype(w2.dtype).itemsize
    mm_dtype = None if w_dtype == jnp.dtype(x.dtype) else w_dtype

    # C_out tiling (second parallel axis; keeps the resident weight slab bounded on v7x).
    if cout_tile is not None:
        tile_co = cout_tile
    else:
        tile_co = _choose_cout_tile(C_out, K * C_in, w_itemsize)
    assert C_out % tile_co == 0 and (tile_co % 8 == 0 or tile_co == C_out)
    n_co = C_out // tile_co

    # Per-generation VMEM budget -> vmem limit and time-tile target.
    try:
        vmem_cap = int(pltpu.get_tpu_info().vmem_capacity_bytes)
    except Exception:
        vmem_cap = 64 << 20                       # conservative (v7x per-TC size)
    vmem_limit = max(32 << 20, vmem_cap * 3 // 4)

    if tl_target is None:
        fixed = tile_co * K * C_in * w_itemsize   # single-buffered weight slab
        fixed += tile_co * 4                      # bias (f32)
        fixed += C_in * pad_up * itemsize         # halo columns of the scratch
        per_col = itemsize * (2 * C_in + 2 * tile_co + C_in)   # 2x in-buf, 2x out-buf, scratch
        budget = max(vmem_limit // 2 - fixed, 128 * per_col)
        tl_target = min(2048, max(128, (budget // per_col) // 128 * 128))

    tl = _choose_time_tile(L_pad, tl_target)
    n_lt = L_pad // tl

    # im2col only when the folded contraction is small (per-tap matmuls already fill the MXU
    # depth for large C_in) and the sublane concat is aligned for the operand dtype.
    concat_dtype = w_dtype if mm_dtype is not None else jnp.dtype(x.dtype)
    granule = max(8, 32 // jnp.dtype(concat_dtype).itemsize)
    use_im2col = (K > 1) and (C_in % granule == 0) and (K * C_in <= 256)
    # TODO(synk): prefer the K-tap accumulate path on v7x (MRB in-place accumulation) even for
    # small C_in, once a stable chip-generation query is available here.

    scratch_cols = (pad_up + tl) if pad > 0 else 128   # dummy (unused) scratch when pad == 0

    kernel = functools.partial(
        _causal_conv1d_kernel,
        K=K, dilation=dilation, pad=pad, pad_up=pad_up,
        tl=tl, n_lt=n_lt, c_in=C_in, use_im2col=use_im2col, mm_dtype=mm_dtype,
    )

    cost = pl.CostEstimate(
        flops=2 * N * K * C_in * C_out * L_pad,
        transcendentals=0,
        bytes_accessed=int(itemsize * (N * C_in * L_pad * n_co + N * C_out * L_pad)
                           + w_itemsize * C_out * K * C_in + 4 * C_out),
    )

    def _call(const_pipeline_mode):
        const_kw = {} if const_pipeline_mode is None else {"pipeline_mode": const_pipeline_mode}
        grid_spec = pltpu.PrefetchScalarGridSpec(
            num_scalar_prefetch=0,
            # Grid order matters: time MUST be innermost + "arbitrary" (halo carry).
            grid=(N, n_co, n_lt),
            in_specs=[
                pl.BlockSpec((None, C_in, tl), lambda n, co, t: (n, 0, t)),
                pl.BlockSpec((tile_co, K * C_in), lambda n, co, t: (co, 0), **const_kw),
                pl.BlockSpec((tile_co, 1), lambda n, co, t: (co, 0), **const_kw),
            ],
            out_specs=pl.BlockSpec((None, tile_co, tl), lambda n, co, t: (n, co, t)),
            scratch_shapes=[pltpu.VMEM((C_in, scratch_cols), x.dtype)],  # halo + tile carry
        )
        return pl.pallas_call(
            kernel,
            out_shape=jax.ShapeDtypeStruct((N, C_out, L_pad), x.dtype),
            grid_spec=grid_spec,
            compiler_params=pltpu.CompilerParams(
                # Batch and C_out tiles shard across TensorCores; time stays sequential.
                dimension_semantics=("parallel", "parallel", "arbitrary"),
                vmem_limit_bytes=int(vmem_limit),
            ),
            cost_estimate=cost,
        )(x, w2, b2)

    try:
        # Single-buffer the (per-time-loop constant) weight/bias blocks: halves their VMEM.
        y = _call(pl.Buffered(1))
    except Exception:
        y = _call(None)   # fallback: default double-buffering if Buffered(1) is unsupported

    # TODO(synk): for N == 1 inference on v7x, switch the halo to a re-read of the previous
    # pad columns (pl.Element time offset) so the time axis can also be marked "parallel".
    if L_pad != L:
        y = y[:, :, :L]
    return y


def _reference_causal_conv1d(x, weight, bias, dilation=1):
    """Plain-JAX reference: Conv1d with left-only causal padding (== pad-both + trailing trim)."""
    K = weight.shape[-1]
    pad = (K - 1) * dilation
    y = lax.conv_general_dilated(
        x, weight,
        window_strides=(1,),
        padding=[(pad, 0)],
        rhs_dilation=(dilation,),
        dimension_numbers=("NCH", "OIH", "NCH"),
    )
    return y + bias.reshape(1, -1, 1)


def _run_case(key, N, C_in, C_out, K, dilation, L, atol=1e-4, rtol=1e-4, **kw):
    k_x, k_w, k_b = jax.random.split(key, 3)
    x = jax.random.normal(k_x, (N, C_in, L), dtype=jnp.float32)
    bound = 1.0 / (C_in * K) ** 0.5
    w = jax.random.uniform(k_w, (C_out, C_in, K), minval=-bound, maxval=bound, dtype=jnp.float32)
    b = jax.random.uniform(k_b, (C_out,), minval=-bound, maxval=bound, dtype=jnp.float32)

    y = causal_conv1d(x, w, b, dilation=dilation, **kw)
    y = jax.block_until_ready(y)

    y_ref = _reference_causal_conv1d(x, w, b, dilation=dilation)
    assert y.shape == (N, C_out, L), y.shape
    err = float(jnp.max(jnp.abs(y - y_ref)))
    assert jnp.allclose(y, y_ref, atol=atol, rtol=rtol), err
    return err


if __name__ == "__main__":
    key = jax.random.PRNGKey(0)
    k1, k2, k3, k4 = jax.random.split(key, 4)

    # Case 1: module-spec sized toy problem. L=16 -> time padded to 128 (lane-dense stores),
    # C_in=4 (unaligned) -> K-tap accumulate path, single time tile.
    _run_case(k1, N=2, C_in=4, C_out=8, K=3, dilation=2, L=16)

    # Case 2: two 128-wide time tiles -> exercises the in-VMEM causal-halo carry and the
    # small-contraction im2col single-matmul path.
    _run_case(k2, N=2, C_in=8, C_out=16, K=3, dilation=2, L=256, tl_target=128)

    # Case 3: forced C_out tiling (second parallel grid axis) together with the halo carry
    # across three time tiles.
    _run_case(k3, N=1, C_in=8, C_out=16, K=5, dilation=1, L=384, tl_target=128, cout_tile=8)

    # Case 4: bf16 matmul operands with f32 accumulation (looser tolerance).
    _run_case(k4, N=2, C_in=16, C_out=16, K=3, dilation=1, L=256,
              matmul_dtype=jnp.bfloat16, atol=2e-2, rtol=2e-2)

    print("KERNEL_OK")
</pallas_src>

<mosaic_0001>
module attributes {stable_mosaic.version = 11 : i64} {
  func.func @_causal_conv1d_kernel(%arg0: i32, %arg1: i32, %arg2: i32, %arg3: memref<1x4x128xf32, #tpu.memory_space<vmem>>, %arg4: memref<8x12xf32, #tpu.memory_space<vmem>>, %arg5: memref<8x1xf32, #tpu.memory_space<vmem>>, %arg6: memref<1x8x128xf32, #tpu.memory_space<vmem>>, %arg7: memref<4x256xf32, #tpu.memory_space<vmem>>) attributes {dimension_semantics = [#tpu.dimension_semantics<parallel>, #tpu.dimension_semantics<parallel>, #tpu.dimension_semantics<arbitrary>], iteration_bounds = array<i64: 2, 1, 1>, scalar_prefetch = 0 : i64, scratch_operands = 1 : i64, tpu.core_type = #tpu.core_type<tc>, window_params = [{transform_indices = @transform_0, window_bounds = array<i64: 1, 4, 128>}, {pipeline_mode = #tpu.pipeline_mode<synchronous>, transform_indices = @transform_1, window_bounds = array<i64: 8, 12>}, {pipeline_mode = #tpu.pipeline_mode<synchronous>, transform_indices = @transform_2, window_bounds = array<i64: 8, 1>}, {transform_indices = @transform_3, window_bounds = array<i64: 1, 8, 128>}]} {
    %c0 = arith.constant 0 : index
    %c0_0 = arith.constant 0 : index
    %c0_1 = arith.constant 0 : index
    %0 = vector.load %arg3[%c0, %c0_0, %c0_1] : memref<1x4x128xf32, #tpu.memory_space<vmem>>, vector<1x4x128xf32>
    %1 = vector.shape_cast %0 : vector<1x4x128xf32> to vector<4x128xf32>
    %c0_i32 = arith.constant 0 : i32
    %2 = arith.cmpi eq, %arg2, %c0_i32 : i32
    %3 = arith.extui %2 : i1 to i32
    %c0_i32_2 = arith.constant 0 : i32
    %4 = arith.cmpi ne, %3, %c0_i32_2 : i32
    scf.if %4 {
      %cst_17 = arith.constant 0.000000e+00 : f32
      %23 = vector.broadcast %cst_17 : f32 to vector<4x128xf32>
      %c0_18 = arith.constant 0 : index
      %c0_19 = arith.constant 0 : index
      %24 = vector.load %arg7[%c0_18, %c0_19] : memref<4x256xf32, #tpu.memory_space<vmem>>, vector<4x128xf32>
      tpu.vector_store %arg7[%c0_18, %c0_19], %23 {strides = array<i32>} : memref<4x256xf32, #tpu.memory_space<vmem>>, vector<4x128xf32>,
    } else {
    }
    %c0_3 = arith.constant 0 : index
    %c128 = arith.constant 128 : index
    %5 = vector.load %arg7[%c0_3, %c128] : memref<4x256xf32, #tpu.memory_space<vmem>>, vector<4x128xf32>
    tpu.vector_store %arg7[%c0_3, %c128], %1 {strides = array<i32>} : memref<4x256xf32, #tpu.memory_space<vmem>>, vector<4x128xf32>,
    %c0_4 = arith.constant 0 : index
    %c124 = arith.constant 124 : index
    %6 = vector.load %arg7[%c0_4, %c124] : memref<4x256xf32, #tpu.memory_space<vmem>>, vector<4x128xf32>
    %c0_5 = arith.constant 0 : index
    %c126 = arith.constant 126 : index
    %7 = vector.load %arg7[%c0_5, %c126] : memref<4x256xf32, #tpu.memory_space<vmem>>, vector<4x128xf32>
    %c0_6 = arith.constant 0 : index
    %c0_7 = arith.constant 0 : index
    %8 = vector.load %arg5[%c0_6, %c0_7] : memref<8x1xf32, #tpu.memory_space<vmem>>, vector<8x1xf32>
    %9 = vector.shape_cast %8 : vector<8x1xf32> to vector<8x1xf32>
    %10 = vector.broadcast %9 : vector<8x1xf32> to vector<8x128xf32>
    %c0_8 = arith.constant 0 : index
    %c0_9 = arith.constant 0 : index
    %11 = vector.load %arg4[%c0_8, %c0_9] : memref<8x12xf32, #tpu.memory_space<vmem>>, vector<8x4xf32>
    %cst = arith.constant dense<0.000000e+00> : vector<8x128xf32>
    %12 = tpu.matmul %11, %6, %cst {dimension_numbers = #tpu.dot_dimension_numbers<[1], [0], [0], [1], [0, 0, 1, 1], [], []>} : vector<8x4xf32>, vector<4x128xf32>, vector<8x128xf32> -> vector<8x128xf32>
    %13 = arith.addf %10, %12 : vector<8x128xf32>
    %c0_10 = arith.constant 0 : index
    %c4 = arith.constant 4 : index
    %14 = vector.load %arg4[%c0_10, %c4] : memref<8x12xf32, #tpu.memory_space<vmem>>, vector<8x4xf32>
    %cst_11 = arith.constant dense<0.000000e+00> : vector<8x128xf32>
    %15 = tpu.matmul %14, %7, %cst_11 {dimension_numbers = #tpu.dot_dimension_numbers<[1], [0], [0], [1], [0, 0, 1, 1], [], []>} : vector<8x4xf32>, vector<4x128xf32>, vector<8x128xf32> -> vector<8x128xf32>
    %16 = arith.addf %13, %15 : vector<8x128xf32>
    %c0_12 = arith.constant 0 : index
    %c8 = arith.constant 8 : index
    %17 = vector.load %arg4[%c0_12, %c8] : memref<8x12xf32, #tpu.memory_space<vmem>>, vector<8x4xf32>
    %cst_13 = arith.constant dense<0.000000e+00> : vector<8x128xf32>
    %18 = tpu.matmul %17, %1, %cst_13 {dimension_numbers = #tpu.dot_dimension_numbers<[1], [0], [0], [1], [0, 0, 1, 1], [], []>} : vector<8x4xf32>, vector<4x128xf32>, vector<8x128xf32> -> vector<8x128xf32>
    %19 = arith.addf %16, %18 : vector<8x128xf32>
    %c0_14 = arith.constant 0 : index
    %c0_15 = arith.constant 0 : index
    %c0_16 = arith.constant 0 : index
    %20 = vector.load %arg6[%c0_14, %c0_15, %c0_16] : memref<1x8x128xf32, #tpu.memory_space<vmem>>, vector<1x8x128xf32>
    %21 = vector.shape_cast %20 : vector<1x8x128xf32> to vector<8x128xf32>
    %22 = vector.shape_cast %19 : vector<8x128xf32> to vector<1x8x128xf32>
    tpu.vector_store %arg6[%c0_14, %c0_15, %c0_16], %22 {strides = array<i32>} : memref<1x8x128xf32, #tpu.memory_space<vmem>>, vector<1x8x128xf32>,
    return
  }
  func.func @transform_0(%arg0: i32, %arg1: i32, %arg2: i32) -> (i32, i32, i32) {
    %c0_i32 = arith.constant 0 : i32
    %c0_i32_0 = arith.constant 0 : i32
    return %arg0, %c0_i32, %arg2 : i32, i32, i32
  }
  func.func @transform_1(%arg0: i32, %arg1: i32, %arg2: i32) -> (i32, i32) {
    %c0_i32 = arith.constant 0 : i32
    %c0_i32_0 = arith.constant 0 : i32
    return %arg1, %c0_i32 : i32, i32
  }
  func.func @transform_2(%arg0: i32, %arg1: i32, %arg2: i32) -> (i32, i32) {
    %c0_i32 = arith.constant 0 : i32
    %c0_i32_0 = arith.constant 0 : i32
    return %arg1, %c0_i32 : i32, i32
  }
  func.func @transform_3(%arg0: i32, %arg1: i32, %arg2: i32) -> (i32, i32, i32) {
    %c0_i32 = arith.constant 0 : i32
    return %arg0, %arg1, %arg2 : i32, i32, i32
  }
}

module attributes {stable_mosaic.version = 11 : i64} {
  func.func @_causal_conv1d_kernel(%arg0: i32, %arg1: i32, %arg2: i32, %arg3: memref<1x4x128xf32, #tpu.memory_space<vmem>>, %arg4: memref<8x12xf32, #tpu.memory_space<vmem>>, %arg5: memref<8x1xf32, #tpu.memory_space<vmem>>, %arg6: memref<1x8x128xf32, #tpu.memory_space<vmem>>, %arg7: memref<4x256xf32, #tpu.memory_space<vmem>>) attributes {dimension_semantics = [#tpu.dimension_semantics<parallel>, #tpu.dimension_semantics<parallel>, #tpu.dimension_semantics<arbitrary>], iteration_bounds = array<i64: 2, 1, 1>, scalar_prefetch = 0 : i64, scratch_operands = 1 : i64, tpu.core_type = #tpu.core_type<tc>, window_params = [{transform_indices = @transform_0, window_bounds = array<i64: 1, 4, 128>}, {transform_indices = @transform_1, window_bounds = array<i64: 8, 12>}, {transform_indices = @transform_2, window_bounds = array<i64: 8, 1>}, {transform_indices = @transform_3, window_bounds = array<i64: 1, 8, 128>}]} {
    %c0 = arith.constant 0 : index
    %c0_0 = arith.constant 0 : index
    %c0_1 = arith.constant 0 : index
    %0 = vector.load %arg3[%c0, %c0_0, %c0_1] : memref<1x4x128xf32, #tpu.memory_space<vmem>>, vector<1x4x128xf32>
    %1 = vector.shape_cast %0 : vector<1x4x128xf32> to vector<4x128xf32>
    %c0_i32 = arith.constant 0 : i32
    %2 = arith.cmpi eq, %arg2, %c0_i32 : i32
    %3 = arith.extui %2 : i1 to i32
    %c0_i32_2 = arith.constant 0 : i32
    %4 = arith.cmpi ne, %3, %c0_i32_2 : i32
    scf.if %4 {
      %cst_17 = arith.constant 0.000000e+00 : f32
      %23 = vector.broadcast %cst_17 : f32 to vector<4x128xf32>
      %c0_18 = arith.constant 0 : index
      %c0_19 = arith.constant 0 : index
      %24 = vector.load %arg7[%c0_18, %c0_19] : memref<4x256xf32, #tpu.memory_space<vmem>>, vector<4x128xf32>
      tpu.vector_store %arg7[%c0_18, %c0_19], %23 {strides = array<i32>} : memref<4x256xf32, #tpu.memory_space<vmem>>, vector<4x128xf32>,
    } else {
    }
    %c0_3 = arith.constant 0 : index
    %c128 = arith.constant 128 : index
    %5 = vector.load %arg7[%c0_3, %c128] : memref<4x256xf32, #tpu.memory_space<vmem>>, vector<4x128xf32>
    tpu.vector_store %arg7[%c0_3, %c128], %1 {strides = array<i32>} : memref<4x256xf32, #tpu.memory_space<vmem>>, vector<4x128xf32>,
    %c0_4 = arith.constant 0 : index
    %c124 = arith.constant 124 : index
    %6 = vector.load %arg7[%c0_4, %c124] : memref<4x256xf32, #tpu.memory_space<vmem>>, vector<4x128xf32>
    %c0_5 = arith.constant 0 : index
    %c126 = arith.constant 126 : index
    %7 = vector.load %arg7[%c0_5, %c126] : memref<4x256xf32, #tpu.memory_space<vmem>>, vector<4x128xf32>
    %c0_6 = arith.constant 0 : index
    %c0_7 = arith.constant 0 : index
    %8 = vector.load %arg5[%c0_6, %c0_7] : memref<8x1xf32, #tpu.memory_space<vmem>>, vector<8x1xf32>
    %9 = vector.shape_cast %8 : vector<8x1xf32> to vector<8x1xf32>
    %10 = vector.broadcast %9 : vector<8x1xf32> to vector<8x128xf32>
    %c0_8 = arith.constant 0 : index
    %c0_9 = arith.constant 0 : index
    %11 = vector.load %arg4[%c0_8, %c0_9] : memref<8x12xf32, #tpu.memory_space<vmem>>, vector<8x4xf32>
    %cst = arith.constant dense<0.000000e+00> : vector<8x128xf32>
    %12 = tpu.matmul %11, %6, %cst {dimension_numbers = #tpu.dot_dimension_numbers<[1], [0], [0], [1], [0, 0, 1, 1], [], []>} : vector<8x4xf32>, vector<4x128xf32>, vector<8x128xf32> -> vector<8x128xf32>
    %13 = arith.addf %10, %12 : vector<8x128xf32>
    %c0_10 = arith.constant 0 : index
    %c4 = arith.constant 4 : index
    %14 = vector.load %arg4[%c0_10, %c4] : memref<8x12xf32, #tpu.memory_space<vmem>>, vector<8x4xf32>
    %cst_11 = arith.constant dense<0.000000e+00> : vector<8x128xf32>
    %15 = tpu.matmul %14, %7, %cst_11 {dimension_numbers = #tpu.dot_dimension_numbers<[1], [0], [0], [1], [0, 0, 1, 1], [], []>} : vector<8x4xf32>, vector<4x128xf32>, vector<8x128xf32> -> vector<8x128xf32>
    %16 = arith.addf %13, %15 : vector<8x128xf32>
    %c0_12 = arith.constant 0 : index
    %c8 = arith.constant 8 : index
    %17 = vector.load %arg4[%c0_12, %c8] : memref<8x12xf32, #tpu.memory_space<vmem>>, vector<8x4xf32>
    %cst_13 = arith.constant dense<0.000000e+00> : vector<8x128xf32>
    %18 = tpu.matmul %17, %1, %cst_13 {dimension_numbers = #tpu.dot_dimension_numbers<[1], [0], [0], [1], [0, 0, 1, 1], [], []>} : vector<8x4xf32>, vector<4x128xf32>, vector<8x128xf32> -> vector<8x128xf32>
    %19 = arith.addf %16, %18 : vector<8x128xf32>
    %c0_14 = arith.constant 0 : index
    %c0_15 = arith.constant 0 : index
    %c0_16 = arith.constant 0 : index
    %20 = vector.load %arg6[%c0_14, %c0_15, %c0_16] : memref<1x8x128xf32, #tpu.memory_space<vmem>>, vector<1x8x128xf32>
    %21 = vector.shape_cast %20 : vector<1x8x128xf32> to vector<8x128xf32>
    %22 = vector.shape_cast %19 : vector<8x128xf32> to vector<1x8x128xf32>
    tpu.vector_store %arg6[%c0_14, %c0_15, %c0_16], %22 {strides = array<i32>} : memref<1x8x128xf32, #tpu.memory_space<vmem>>, vector<1x8x128xf32>,
    return
  }
  func.func @transform_0(%arg0: i32, %arg1: i32, %arg2: i32) -> (i32, i32, i32) {
    %c0_i32 = arith.constant 0 : i32
    %c0_i32_0 = arith.constant 0 : i32
    return %arg0, %c0_i32, %arg2 : i32, i32, i32
  }
  func.func @transform_1(%arg0: i32, %arg1: i32, %arg2: i32) -> (i32, i32) {
    %c0_i32 = arith.constant 0 : i32
    %c0_i32_0 = arith.constant 0 : i32
    return %arg1, %c0_i32 : i32, i32
  }
  func.func @transform_2(%arg0: i32, %arg1: i32, %arg2: i32) -> (i32, i32) {
    %c0_i32 = arith.constant 0 : i32
    %c0_i32_0 = arith.constant 0 : i32
    return %arg1, %c0_i32 : i32, i32
  }
  func.func @transform_3(%arg0: i32, %arg1: i32, %arg2: i32) -> (i32, i32, i32) {
    %c0_i32 = arith.constant 0 : i32
    return %arg0, %arg1, %arg2 : i32, i32, i32
  }
}

</mosaic_0001>

<bundles_post_ra>
// kernel: tpu_custom_call.1
= control target key start
LH: loop header
LB: loop body
LE: loop exit
PB: predicated region body
PF: predicated region fallthrough
CT: control target
= control target key end

     0   :  { %8 = vsyncpa [#allocation4], 0  ;;  %s1040_s0 = inlined_call_operand.vmem [shape: f32[2,4,128], index: 0, kind: input, shape index: {}]   ;;  %s1041_s1 = inlined_call_operand.hbm [shape: f32[8,12], index: 1, kind: input, shape index: {}]   ;;  %s1042_s2 = inlined_call_operand.vmem [shape: f32[8,1], index: 2, kind: input, shape index: {}]   ;;  %s1043_s3 = inlined_call_operand.hbm [shape: f32[2,8,128], index: 3, kind: output, shape index: {}]  }
   0x1   :  { %9 = vsyncpa [#allocation5], 0 }
   0x2   :  { %11 = vsyncpa [#allocation5 + $0x1], 0  ;;  %s884_s12 = smov 0   ;;  %s886_s13 = smov 0  }
   0x3   :  { %s888_s14 = smov 0   ;;  %s890_s15 = smov 0  }
   0x4   :  { %s892_s16 = smov 0   ;;  %s894_s17 = smov 0  }
   0x5 LB: > { %s623_s18 = sadd.s32 4294967295, %s853_s17   ;;  %s624_s19 = sadd.s32 4294967294, %s853_s17   ;;  %s853_s17 = sphi %s894_s17, %s17_s17   ;;  %s849_s16 = sphi %s892_s16, %s1061_s16   ;;  %s845_s15 = sphi %s890_s15, %s1060_s15   ;;  %s841_s14 = sphi %s888_s14, %s1059_s14   ;;  %s837_s13 = sphi %s886_s13, %s1058_s13   ;;  %s833_s12 = sphi %s884_s12, %s1057_s12  }
   0x6   : > { %s36_s20 = sadd.s32 1, %s849_s16  ;;  %s127_s21 = sadd.s32 1, %s841_s14 }
   0x7   : > { %p38_p0 = scmp.ge.s32.totalorder %s36_s20, 2  ;;  %p137_p1 = scmp.ne.s32.totalorder %s841_s14, %s837_s13 }
   0x8   : > { %p138_p2 = scmp.eq.s32.totalorder %s623_s18, 1  ;;  %p143_p3 = scmp.ne.s32.totalorder %s837_s13, %s833_s12 }
   0x9   : > { %s1063_s20 = smov (%p38_p0, %s36_s20), 0  ;;  %p144_p5 = scmp.eq.s32.totalorder %s624_s19, 1 }
   0xa   : > { %p924_p4 = por %p138_p2, %p137_p1  ;;  %s120_s23 = ssub.s32 %s849_s16, %s1063_s20 }
   0xb   : > { %p625_p6 = scmp.ge.s32.totalorder %s853_s17, 1  ;;  %p125_p7 = scmp.eq.s32.totalorder %s120_s23, 0 }
   0xc   : > { %s1048_s22 = scalar_select %p924_p4, 1, 0 }
   0xd   : > { %p931_p8 = por %p144_p5, %p143_p3  ;;  %p151_p9 = scmp.lt.s32.totalorder %s853_s17, 3 }
   0xe   : > { %s937_s25 = scalar_select %p125_p7, %s841_s14, %s127_s21  }
   0xf   : > { %s1049_s24 = scalar_select %p931_p8, 1, 0 }
  0x10   : > { %p939_p10 = pnand %p625_p6, %p151_p9  ;;  %p943_p11 = scmp.eq.s32.totalorder %s623_s18, 0 }
  0x11   : > { %s855_s28 = smov [#allocation3]   ;;  %s743_s6 = scalar_lea.hbm %s1041_s1, 128 }
  0x12   : > { %s1050_s26 = scalar_select %p939_p10, 1, 0 }
  0x13   : > { %s1051_s27 = scalar_select %p943_p11, 1, 0 }
  0x14   : > { %p674_p12 = pneg %p939_p10  ;;  %s166_s29 = sshll.u32 %s855_s28, 4  ;;  %s167_s29 = int_to_ptr.vmem [resolvable:$true] %s166_s29 }
  0x15   : > { %p744_p0 = scmp.ne.s32.totalorder %s1041_s1, %s743_s6  ;;  %p750_p5 = scmp.lt.u32.totalorder %s743_s6, %s1041_s1 }
  0x16   : > { %p951_p13 = pnand %p943_p11, %p674_p12 }
  0x18   : > { %p745_p1 = pneg %p951_p13 }
  0x1a   : > { %p746_p2 = pnand %p745_p1, %p744_p0 }
  0x1c   : > { %p747_p3 = pneg %p746_p2 }
  0x1e   : > { %p752_p6 = pnand %p750_p5, %p747_p3 }
  0x20   : > { %755 = shalt.err (!%p752_p6)
}
  0x21   : > { %s756_s11 = scalar_lea.vmem %s167_s29, 128  ;;  %p764_p8 = scmp.lt.s32.totalorder %s167_s29, %s167_s29 }
  0x22   : > { %p757_p7 = scmp.ne.s32.totalorder %s167_s29, %s756_s11  ;;  %p765_p4 = scmp.lt.s32.totalorder %s756_s11, %s756_s11 }
  0x24   : > { %p759_p9 = pnand %p757_p7, %p745_p1  ;;  %p766_p11 = por %p765_p4, %p764_p8 }
  0x26   : > { %p760_p12 = pneg %p759_p9 }
  0x28   : > { %p767_p10 = pnand %p766_p11, %p760_p12 }
  0x2a   : > { %770 = shalt.err (!%p767_p10)
}
  0x2b   : > { %677 = dma.hbm_to_vmem [thread:$0]  (!%p951_p13), %s1041_s1, 128, %s167_s29, [#allocation4]  }
  0x2c   : > { %p1053_p0 = scmp.ne.s32.totalorder %s1050_s26, 0 }
  0x2d   : > { %p1054_p2 = scmp.ne.s32.totalorder (!%p1053_p0), %s1051_s27, 0 }
  0x2e   : > { %196 = sbr.rel (%p1053_p0) target bundleno = 426 (0x1aa), region = 32 }
  0x35   : > { %824 = dma.done.wait (%p1054_p2), [#allocation4], 128  }
  0x36   : > { %826 = vsyncadd (%p1054_p2), [#allocation4], 4294967168  ;;  %p226_p4 = scmp.lt.s32.totalorder %s845_s15, 1  ;;  %v856_v0 = vmov 0.0   ;;  %v337_v2 = vld [vmem:[#allocation3] sm:$0xff]  ;;  %vm857_vm0 = vmmov 0  }
  0x37   : > { %242 = vst [vmem:[#allocation2] sm:$0xf] %v856_v0  ;;  %654 = vmatprep.subr.mxu0 %v856_v0  ;;  %649 = vmatprep.subr.mxu1 %v856_v0  ;;  %s858_s27 = smov 124   ;;  %s859_s30 = smov 2   ;;  %v861_v5 = vmov 0   ;;  %v245_v6 = vld [vmem:[%s1042_s2] sm:$0xff] }
  0x38   : > { %s227_s21 = scalar_select %p226_p4, %s845_s15, 1  ;;  %656 = vmatprep.mubr.msk.f32.mxu0 %vm857_vm0, %v856_v0  ;;  %651 = vmatprep.mubr.msk.f32.mxu1 %vm857_vm0, %v856_v0  ;;  %vm345_vm1 = vcmask 15360   ;;  %vm263_vm2 = vcmask 1043456   ;;  %vm258_vm3 = vcmask 31744  }
  0x39   : > { %339 = vrot.lane.b32.xlu1 %v337_v2, %s858_s27  ;;  %s860_s4 = smov 4   ;;  %741 = vset.pattern.permute.xlu0 %v861_v5  ;;  %s862_s5 = smov 120  }
  0x3a   : > { %s632_s23 = sshll.u32 %s227_s21, 2  ;;  %s223_s8 = sand.u32 1, %s837_s13  }
  0x3b   : > { %s232_s26 = scalar_lea.vmem %s1040_s0, %s632_s23  ;;  %s631_s9 = sshll.u32 %s223_s8, 3 }
  0x3c   : > { %v237_v1 = vld [vmem:[%s232_s26] sm:$0xf]  ;;  %s640_s10 = sshll.u32 %s845_s15, 7  ;;  %s225_s11 = scalar_lea.vmem [#allocation6], %s631_s9 }
  0x3d   : > { %243 = vst [vmem:[#allocation2 + $0x4] sm:$0xf] %v237_v1  ;;  %s519_s18 = sshll.u32 %s225_s11, 4  ;;  %s993_s23 = scalar_lea.hbm %s1043_s3, %s640_s10  ;;  %s995_s18 = int_to_ptr.vmem [resolvable:$true] %s519_s18 }
  0x3e   : > { %s504_s28 = scalar_lea.sflag [#allocation5], %s223_s8  ;;  %s771_s29 = scalar_lea.vmem %s995_s18, 128 }
  0x3f   : > { %p772_p8 = scmp.ne.s32.totalorder %s995_s18, %s771_s29  ;;  %p1055_p10 = scmp.ne.s32.totalorder %s1048_s22, 0 }
  0x40   : > { %s863_s15 = smov [#allocation6]  }
  0x41   : > { %p773_p11 = pnand %p772_p8, %p1055_p10  ;;  %s775_s26 = sshll.u32 %s863_s15, 4  ;;  %s776_s26 = int_to_ptr.vmem [resolvable:$false] %s775_s26 }
  0x42   : > { %s777_s27 = scalar_lea.vmem %s776_s26, 256  ;;  %p778_p1 = scmp.lt.s32.totalorder %s995_s18, %s776_s26 }
  0x43   : > { %p774_p13 = pneg %p773_p11  ;;  %p779_p3 = scmp.lt.s32.totalorder %s777_s27, %s771_s29 }
  0x44   : > { %v244_v3 = vld [vmem:[#allocation2] sm:$0xff] }
  0x45   : > { %341 = vrot.lane.b32.xlu0 %v244_v3, %s859_s30  ;;  %v253_v4 = vcombine.high %v244_v3, %v244_v3  ;;  %254 = vrot.lane.b32.xlu1 %v244_v3, %s860_s4  ;;  %p780_p5 = por %p779_p3, %p778_p1 }
  0x47   : > { %p781_p6 = pnand %p780_p5, %p774_p13 }
  0x49   : > { %343 = vrot.lane.b32.xlu0 %v253_v4, %s859_s30  ;;  %424 = vrot.lane.b32.xlu1 %v337_v2, %s862_s5 }
  0x4d   : > { %256 = vrot.lane.b32.xlu0 %v253_v4, %s860_s4 }
  0x51   : > { %248 = vperm.xlu0 %741, %v245_v6  }
  0xab   : > { %v340_v8 = vpop.permute.xlu1 %339 }
  0xb7   : > { %v342_v7 = vpop.permute.xlu0 %341  ;;  %v255_v11 = vpop.permute.xlu1 %254 }
  0xbb   : > { %v344_v9 = vpop.permute.xlu0 %343  ;;  %v425_v14 = vpop.permute.xlu1 %424 }
  0xbc   : > { %v346_v10 = vsel %vm345_vm1, %v342_v7, %v344_v9 }
  0xbd   : > { %655 = vmatpush3.msk.msra.mxu0 %vm263_vm2, %v346_v10 }
  0xbe   : > { %657 = vmatmul.mubr.msk.f32.vlgmr.msra.gmra.mrb[0].mxu0 %vm258_vm3, %v340_v8  ;;  %659 = vmatprep.subr.mxu0 %v856_v0 }
  0xbf   : > { %660 = vmatpush3.msk.msra.mxu0 %vm263_vm2, %v237_v1  ;;  %v257_v12 = vpop.permute.xlu0 %256  ;;  %661 = vmatprep.mubr.msk.f32.mxu0 %vm857_vm0, %v856_v0 }
  0xc0   : > { %v259_v13 = vsel %vm258_vm3, %v255_v11, %v257_v12 }
  0xc1   : > { %650 = vmatpush3.msk.msra.mxu1 %vm263_vm2, %v259_v13 }
  0xc2   : > { %652 = vmatmul.mubr.msk.f32.vlgmr.msra.gmra.mrb[0].mxu1 %vm258_vm3, %v337_v2 }
  0xc6   : > { %662 = vmatmul.mubr.msk.f32.vlgmr.msra.gmra.mrb[0].mxu0 %vm258_vm3, %v425_v14 }
  0xd0   : > { %v249_v15 = vpop.permute.xlu0 %248 }
 0x195   : > { %v332_v16 = vpop.f32.mrb[0].mxu1 }
 0x196   : > { %v336_v17 = vadd.f32 %v332_v16, %v249_v15  ;;  %v653_v18 = vpop.f32.mrb[1].mxu1 }
 0x199   : > { %v497_v19 = vpop.f32.mrb[0].mxu0 }
 0x19a   : > { %v665_v20 = vadd.f32 %v497_v19, %v336_v17  ;;  %v663_v21 = vpop.f32.mrb[1].mxu0 }
 0x19c   : > { %502 = vst [vmem:[%s225_s11] sm:$0xff] %v665_v20 }
 0x19d   : > { %784 = shalt.err (!%p781_p6)
}
 0x19e   : > { %s785_s30 = scalar_lea.hbm %s993_s23, 128  ;;  %s789_s6 = scalar_lea.hbm %s1043_s3, 256 }
 0x19f   : > { %p786_p7 = scmp.ne.s32.totalorder %s993_s23, %s785_s30  ;;  %p790_p0 = scmp.lt.u32.totalorder %s993_s23, %s1043_s3 }
 0x1a0   : > { %p791_p2 = scmp.lt.u32.totalorder %s789_s6, %s785_s30  ;;  %p793_p8 = scmp.lt.u32.totalorder %s785_s30, %s993_s23 }
 0x1a1   : > { %p787_p9 = pnand %p786_p7, %p1055_p10 }
 0x1a2   : > { %p792_p4 = por %p791_p2, %p790_p0 }
 0x1a3   : > { %p788_p12 = pneg %p787_p9 }
 0x1a4   : > { %p794_p11 = por %p793_p8, %p792_p4 }
 0x1a6   : > { %p795_p13 = pnand %p794_p11, %p788_p12 }
 0x1a8   : > { %798 = shalt.err (!%p795_p13)
}
 0x1a9   : > { %672 = dma.vmem_to_hbm [thread:$0]  (%p1055_p10), %s995_s18, 128, %s993_s23, %s504_s28  }
 0x1aa PF: > { %p684_p1 = scmp.ge.s32.totalorder %s853_s17, 2  ;;  %s531_s9 = sand.u32 1, %s833_s12  }
 0x1ab   : > { %p1056_p3 = scmp.ne.s32.totalorder %s1049_s24, 0  ;;  %s532_s10 = scalar_lea.sflag [#allocation5], %s531_s9 }
 0x1ad   : > { %p679_p5 = pnand %p684_p1, %p1056_p3 }
 0x1af   : > { %828 = dma.done.wait (!%p679_p5), %s532_s10, 128  }
 0x1b0   : > { %830 = vsyncadd (!%p679_p5), %s532_s10, 4294967168  ;;  %s17_s17 = sadd.s32 1, %s853_s17   ;;  %s1057_s12 = smov %s837_s13 }
 0x1b1   : > { %p14_p6 = scmp.ge.s32.totalorder %s17_s17, 4   ;;  %s1058_s13 = smov %s841_s14 }
 0x1b2   : > { %s1059_s14 = smov %s937_s25  ;;  %s1060_s15 = smov %s849_s16 }
 0x1b3   : > { %s1061_s16 = smov %s1063_s20  ;;  %16 = sbr.rel (!%p14_p6) target bundleno = 5 (0x5), region = 80 }
 0x1ba   :  { %537 = vsyncpa [#allocation4], 1 }
 0x1bb   :  { %539 = vsyncpa [#allocation4 + $0x1], 1 }
 0x1bc   :  { %540 = vsyncpa [#allocation5], 1 }
 0x1bd   :  { %542 = vsyncpa [#allocation5 + $0x1], 1 }

// kernel: tpu_custom_call.1
= control target key start
LH: loop header
LB: loop body
LE: loop exit
PB: predicated region body
PF: predicated region fallthrough
CT: control target
= control target key end

     0   :  { %8 = vsyncpa [#allocation4], 0  ;;  %s1040_s0 = inlined_call_operand.vmem [shape: f32[2,4,128], index: 0, kind: input, shape index: {}]   ;;  %s1041_s1 = inlined_call_operand.hbm [shape: f32[8,12], index: 1, kind: input, shape index: {}]   ;;  %s1042_s2 = inlined_call_operand.vmem [shape: f32[8,1], index: 2, kind: input, shape index: {}]   ;;  %s1043_s3 = inlined_call_operand.hbm [shape: f32[2,8,128], index: 3, kind: output, shape index: {}]  }
   0x1   :  { %9 = vsyncpa [#allocation5], 0 }
   0x2   :  { %11 = vsyncpa [#allocation5 + $0x1], 0  ;;  %s884_s12 = smov 0   ;;  %s886_s13 = smov 0  }
   0x3   :  { %s888_s14 = smov 0   ;;  %s890_s15 = smov 0  }
   0x4   :  { %s892_s16 = smov 0   ;;  %s894_s17 = smov 0  }
   0x5 LB: > { %s623_s18 = sadd.s32 4294967295, %s853_s17   ;;  %s624_s19 = sadd.s32 4294967294, %s853_s17   ;;  %s853_s17 = sphi %s894_s17, %s17_s17   ;;  %s849_s16 = sphi %s892_s16, %s1061_s16   ;;  %s845_s15 = sphi %s890_s15, %s1060_s15   ;;  %s841_s14 = sphi %s888_s14, %s1059_s14   ;;  %s837_s13 = sphi %s886_s13, %s1058_s13   ;;  %s833_s12 = sphi %s884_s12, %s1057_s12  }
   0x6   : > { %s36_s20 = sadd.s32 1, %s849_s16  ;;  %s127_s21 = sadd.s32 1, %s841_s14 }
   0x7   : > { %p38_p0 = scmp.ge.s32.totalorder %s36_s20, 2  ;;  %p137_p1 = scmp.ne.s32.totalorder %s841_s14, %s837_s13 }
   0x8   : > { %p138_p2 = scmp.eq.s32.totalorder %s623_s18, 1  ;;  %p143_p3 = scmp.ne.s32.totalorder %s837_s13, %s833_s12 }
   0x9   : > { %s1063_s20 = smov (%p38_p0, %s36_s20), 0  ;;  %p144_p5 = scmp.eq.s32.totalorder %s624_s19, 1 }
   0xa   : > { %p924_p4 = por %p138_p2, %p137_p1  ;;  %s120_s23 = ssub.s32 %s849_s16, %s1063_s20 }
   0xb   : > { %p625_p6 = scmp.ge.s32.totalorder %s853_s17, 1  ;;  %p125_p7 = scmp.eq.s32.totalorder %s120_s23, 0 }
   0xc   : > { %s1048_s22 = scalar_select %p924_p4, 1, 0 }
   0xd   : > { %p931_p8 = por %p144_p5, %p143_p3  ;;  %p151_p9 = scmp.lt.s32.totalorder %s853_s17, 3 }
   0xe   : > { %s937_s25 = scalar_select %p125_p7, %s841_s14, %s127_s21  }
   0xf   : > { %s1049_s24 = scalar_select %p931_p8, 1, 0 }
  0x10   : > { %p939_p10 = pnand %p625_p6, %p151_p9  ;;  %p943_p11 = scmp.eq.s32.totalorder %s623_s18, 0 }
  0x11   : > { %s855_s28 = smov [#allocation3]   ;;  %s743_s6 = scalar_lea.hbm %s1041_s1, 128 }
  0x12   : > { %s1050_s26 = scalar_select %p939_p10, 1, 0 }
  0x13   : > { %s1051_s27 = scalar_select %p943_p11, 1, 0 }
  0x14   : > { %p674_p12 = pneg %p939_p10  ;;  %s166_s29 = sshll.u32 %s855_s28, 4  ;;  %s167_s29 = int_to_ptr.vmem [resolvable:$true] %s166_s29 }
  0x15   : > { %p744_p0 = scmp.ne.s32.totalorder %s1041_s1, %s743_s6  ;;  %p750_p5 = scmp.lt.u32.totalorder %s743_s6, %s1041_s1 }
  0x16   : > { %p951_p13 = pnand %p943_p11, %p674_p12 }
  0x18   : > { %p745_p1 = pneg %p951_p13 }
  0x1a   : > { %p746_p2 = pnand %p745_p1, %p744_p0 }
  0x1c   : > { %p747_p3 = pneg %p746_p2 }
  0x1e   : > { %p752_p6 = pnand %p750_p5, %p747_p3 }
  0x20   : > { %755 = shalt.err (!%p752_p6)
}
  0x21   : > { %s756_s11 = scalar_lea.vmem %s167_s29, 128  ;;  %p764_p8 = scmp.lt.s32.totalorder %s167_s29, %s167_s29 }
  0x22   : > { %p757_p7 = scmp.ne.s32.totalorder %s167_s29, %s756_s11  ;;  %p765_p4 = scmp.lt.s32.totalorder %s756_s11, %s756_s11 }
  0x24   : > { %p759_p9 = pnand %p757_p7, %p745_p1  ;;  %p766_p11 = por %p765_p4, %p764_p8 }
  0x26   : > { %p760_p12 = pneg %p759_p9 }
  0x28   : > { %p767_p10 = pnand %p766_p11, %p760_p12 }
  0x2a   : > { %770 = shalt.err (!%p767_p10)
}
  0x2b   : > { %677 = dma.hbm_to_vmem [thread:$0]  (!%p951_p13), %s1041_s1, 128, %s167_s29, [#allocation4]  }
  0x2c   : > { %p1053_p0 = scmp.ne.s32.totalorder %s1050_s26, 0 }
  0x2d   : > { %p1054_p2 = scmp.ne.s32.totalorder (!%p1053_p0), %s1051_s27, 0 }
  0x2e   : > { %196 = sbr.rel (%p1053_p0) target bundleno = 426 (0x1aa), region = 32 }
  0x35   : > { %824 = dma.done.wait (%p1054_p2), [#allocation4], 128  }
  0x36   : > { %826 = vsyncadd (%p1054_p2), [#allocation4], 4294967168  ;;  %p226_p4 = scmp.lt.s32.totalorder %s845_s15, 1  ;;  %v856_v0 = vmov 0.0   ;;  %v337_v2 = vld [vmem:[#allocation3] sm:$0xff]  ;;  %vm857_vm0 = vmmov 0  }
  0x37   : > { %242 = vst [vmem:[#allocation2] sm:$0xf] %v856_v0  ;;  %654 = vmatprep.subr.mxu0 %v856_v0  ;;  %649 = vmatprep.subr.mxu1 %v856_v0  ;;  %s858_s27 = smov 124   ;;  %s859_s30 = smov 2   ;;  %v861_v5 = vmov 0   ;;  %v245_v6 = vld [vmem:[%s1042_s2] sm:$0xff] }
  0x38   : > { %s227_s21 = scalar_select %p226_p4, %s845_s15, 1  ;;  %656 = vmatprep.mubr.msk.f32.mxu0 %vm857_vm0, %v856_v0  ;;  %651 = vmatprep.mubr.msk.f32.mxu1 %vm857_vm0, %v856_v0  ;;  %vm345_vm1 = vcmask 15360   ;;  %vm263_vm2 = vcmask 1043456   ;;  %vm258_vm3 = vcmask 31744  }
  0x39   : > { %339 = vrot.lane.b32.xlu1 %v337_v2, %s858_s27  ;;  %s860_s4 = smov 4   ;;  %741 = vset.pattern.permute.xlu0 %v861_v5  ;;  %s862_s5 = smov 120  }
  0x3a   : > { %s632_s23 = sshll.u32 %s227_s21, 2  ;;  %s223_s8 = sand.u32 1, %s837_s13  }
  0x3b   : > { %s232_s26 = scalar_lea.vmem %s1040_s0, %s632_s23  ;;  %s631_s9 = sshll.u32 %s223_s8, 3 }
  0x3c   : > { %v237_v1 = vld [vmem:[%s232_s26] sm:$0xf]  ;;  %s640_s10 = sshll.u32 %s845_s15, 7  ;;  %s225_s11 = scalar_lea.vmem [#allocation6], %s631_s9 }
  0x3d   : > { %243 = vst [vmem:[#allocation2 + $0x4] sm:$0xf] %v237_v1  ;;  %s519_s18 = sshll.u32 %s225_s11, 4  ;;  %s993_s23 = scalar_lea.hbm %s1043_s3, %s640_s10  ;;  %s995_s18 = int_to_ptr.vmem [resolvable:$true] %s519_s18 }
  0x3e   : > { %s504_s28 = scalar_lea.sflag [#allocation5], %s223_s8  ;;  %s771_s29 = scalar_lea.vmem %s995_s18, 128 }
  0x3f   : > { %p772_p8 = scmp.ne.s32.totalorder %s995_s18, %s771_s29  ;;  %p1055_p10 = scmp.ne.s32.totalorder %s1048_s22, 0 }
  0x40   : > { %s863_s15 = smov [#allocation6]  }
  0x41   : > { %p773_p11 = pnand %p772_p8, %p1055_p10  ;;  %s775_s26 = sshll.u32 %s863_s15, 4  ;;  %s776_s26 = int_to_ptr.vmem [resolvable:$false] %s775_s26 }
  0x42   : > { %s777_s27 = scalar_lea.vmem %s776_s26, 256  ;;  %p778_p1 = scmp.lt.s32.totalorder %s995_s18, %s776_s26 }
  0x43   : > { %p774_p13 = pneg %p773_p11  ;;  %p779_p3 = scmp.lt.s32.totalorder %s777_s27, %s771_s29 }
  0x44   : > { %v244_v3 = vld [vmem:[#allocation2] sm:$0xff] }
  0x45   : > { %341 = vrot.lane.b32.xlu0 %v244_v3, %s859_s30  ;;  %v253_v4 = vcombine.high %v244_v3, %v244_v3  ;;  %254 = vrot.lane.b32.xlu1 %v244_v3, %s860_s4  ;;  %p780_p5 = por %p779_p3, %p778_p1 }
  0x47   : > { %p781_p6 = pnand %p780_p5, %p774_p13 }
  0x49   : > { %343 = vrot.lane.b32.xlu0 %v253_v4, %s859_s30  ;;  %424 = vrot.lane.b32.xlu1 %v337_v2, %s862_s5 }
  0x4d   : > { %256 = vrot.lane.b32.xlu0 %v253_v4, %s860_s4 }
  0x51   : > { %248 = vperm.xlu0 %741, %v245_v6  }
  0xab   : > { %v340_v8 = vpop.permute.xlu1 %339 }
  0xb7   : > { %v342_v7 = vpop.permute.xlu0 %341  ;;  %v255_v11 = vpop.permute.xlu1 %254 }
  0xbb   : > { %v344_v9 = vpop.permute.xlu0 %343  ;;  %v425_v14 = vpop.permute.xlu1 %424 }
  0xbc   : > { %v346_v10 = vsel %vm345_vm1, %v342_v7, %v344_v9 }
  0xbd   : > { %655 = vmatpush3.msk.msra.mxu0 %vm263_vm2, %v346_v10 }
  0xbe   : > { %657 = vmatmul.mubr.msk.f32.vlgmr.msra.gmra.mrb[0].mxu0 %vm258_vm3, %v340_v8  ;;  %659 = vmatprep.subr.mxu0 %v856_v0 }
  0xbf   : > { %660 = vmatpush3.msk.msra.mxu0 %vm263_vm2, %v237_v1  ;;  %v257_v12 = vpop.permute.xlu0 %256  ;;  %661 = vmatprep.mubr.msk.f32.mxu0 %vm857_vm0, %v856_v0 }
  0xc0   : > { %v259_v13 = vsel %vm258_vm3, %v255_v11, %v257_v12 }
  0xc1   : > { %650 = vmatpush3.msk.msra.mxu1 %vm263_vm2, %v259_v13 }
  0xc2   : > { %652 = vmatmul.mubr.msk.f32.vlgmr.msra.gmra.mrb[0].mxu1 %vm258_vm3, %v337_v2 }
  0xc6   : > { %662 = vmatmul.mubr.msk.f32.vlgmr.msra.gmra.mrb[0].mxu0 %vm258_vm3, %v425_v14 }
  0xd0   : > { %v249_v15 = vpop.permute.xlu0 %248 }
 0x195   : > { %v332_v16 = vpop.f32.mrb[0].mxu1 }
 0x196   : > { %v336_v17 = vadd.f32 %v332_v16, %v249_v15  ;;  %v653_v18 = vpop.f32.mrb[1].mxu1 }
 0x199   : > { %v497_v19 = vpop.f32.mrb[0].mxu0 }
 0x19a   : > { %v665_v20 = vadd.f32 %v497_v19, %v336_v17  ;;  %v663_v21 = vpop.f32.mrb[1].mxu0 }
 0x19c   : > { %502 = vst [vmem:[%s225_s11] sm:$0xff] %v665_v20 }
 0x19d   : > { %784 = shalt.err (!%p781_p6)
}
 0x19e   : > { %s785_s30 = scalar_lea.hbm %s993_s23, 128  ;;  %s789_s6 = scalar_lea.hbm %s1043_s3, 256 }
 0x19f   : > { %p786_p7 = scmp.ne.s32.totalorder %s993_s23, %s785_s30  ;;  %p790_p0 = scmp.lt.u32.totalorder %s993_s23, %s1043_s3 }
 0x1a0   : > { %p791_p2 = scmp.lt.u32.totalorder %s789_s6, %s785_s30  ;;  %p793_p8 = scmp.lt.u32.totalorder %s785_s30, %s993_s23 }
 0x1a1   : > { %p787_p9 = pnand %p786_p7, %p1055_p10 }
 0x1a2   : > { %p792_p4 = por %p791_p2, %p790_p0 }
 0x1a3   : > { %p788_p12 = pneg %p787_p9 }
 0x1a4   : > { %p794_p11 = por %p793_p8, %p792_p4 }
 0x1a6   : > { %p795_p13 = pnand %p794_p11, %p788_p12 }
 0x1a8   : > { %798 = shalt.err (!%p795_p13)
}
 0x1a9   : > { %672 = dma.vmem_to_hbm [thread:$0]  (%p1055_p10), %s995_s18, 128, %s993_s23, %s504_s28  }
 0x1aa PF: > { %p684_p1 = scmp.ge.s32.totalorder %s853_s17, 2  ;;  %s531_s9 = sand.u32 1, %s833_s12  }
 0x1ab   : > { %p1056_p3 = scmp.ne.s32.totalorder %s1049_s24, 0  ;;  %s532_s10 = scalar_lea.sflag [#allocation5], %s531_s9 }
 0x1ad   : > { %p679_p5 = pnand %p684_p1, %p1056_p3 }
 0x1af   : > { %828 = dma.done.wait (!%p679_p5), %s532_s10, 128  }
 0x1b0   : > { %830 = vsyncadd (!%p679_p5), %s532_s10, 4294967168  ;;  %s17_s17 = sadd.s32 1, %s853_s17   ;;  %s1057_s12 = smov %s837_s13 }
 0x1b1   : > { %p14_p6 = scmp.ge.s32.totalorder %s17_s17, 4   ;;  %s1058_s13 = smov %s841_s14 }
 0x1b2   : > { %s1059_s14 = smov %s937_s25  ;;  %s1060_s15 = smov %s849_s16 }
 0x1b3   : > { %s1061_s16 = smov %s1063_s20  ;;  %16 = sbr.rel (!%p14_p6) target bundleno = 5 (0x5), region = 80 }
 0x1ba   :  { %537 = vsyncpa [#allocation4], 1 }
 0x1bb   :  { %539 = vsyncpa [#allocation4 + $0x1], 1 }
 0x1bc   :  { %540 = vsyncpa [#allocation5], 1 }
 0x1bd   :  { %542 = vsyncpa [#allocation5 + $0x1], 1 }

</bundles_post_ra>
